<compile_context>
chip_gen: v6e
topology: v6e:2x2x1
jax: 0.10.0
libtpu: 0.0.40
codegen_flags: <defaults>
</compile_context>

<pallas_src>
import math

import jax
import jax.numpy as jnp
from jax import lax
from jax.experimental import pallas as pl
from jax.experimental.pallas import tpu as pltpu

LOG_2PI = math.log(2.0 * math.pi)
LANES = 128
SUBLANES = 8
SMALL_INPUT_BYTES = 4 * 1024 * 1024    # below this, XLA's fused reduce wins
MAX_BLOCK_BYTES = 8 * 1024 * 1024      # per streamed input block


def _round_up(x, m):
    return ((x + m - 1) // m) * m


def _cdiv(a, b):
    return (a + b - 1) // b


def _tpu_vmem_and_cores():
    """Best-effort hardware query; conservative defaults if anything is missing."""
    vmem, cores = None, None
    try:
        info = pltpu.get_tpu_info()
    except Exception:
        info = None
    if info is not None:
        v = getattr(info, "vmem_capacity_bytes", None)
        try:
            if v is not None and int(v) > 0:
                vmem = int(v)
        except Exception:
            pass
        for name in ("num_cores", "tensorcores_per_chip", "num_tensorcores",
                     "cores_per_chip", "tensor_cores_per_chip"):
            c = getattr(info, name, None)
            try:
                if c is not None and int(c) > 0:
                    cores = int(c)
                    break
            except Exception:
                pass
    if vmem is None:
        vmem = 64 * 1024 * 1024        # conservative: v7x per-TensorCore VMEM
    if cores is None:
        cores = 1                      # conservative: single-TC (v5e / v6e)
    return vmem, min(cores, 2)


def _make_sumsq_kernel(tile_rows, steps_per_split, full_blocks, total_rows,
                       needs_mask):
    """Streaming sum-of-squares; accumulator is a single (8, 128) vreg."""
    strips = tile_rows // SUBLANES

    def _accum(acc_ref, z):
        zz = z * z                                           # pure VPU
        acc_ref[...] += jnp.sum(zz.reshape(strips, SUBLANES, LANES), axis=0)

    def kernel(z_ref, out_ref, acc_ref):
        s = pl.program_id(0)
        i = pl.program_id(1)

        @pl.when(i == 0)
        def _():
            acc_ref[...] = jnp.zeros_like(acc_ref)

        z = z_ref[...].astype(jnp.float32)                   # (tile_rows, 128)

        if needs_mask:
            g = s * steps_per_split + i                      # global block index

            @pl.when(g < full_blocks)
            def _():
                _accum(acc_ref, z)

            @pl.when(g >= full_blocks)
            def _():
                # Ragged last block (or a clamped out-of-range block): zero the
                # rows past the end of the data before squaring.
                bound = total_rows - g * tile_rows           # may be <= 0
                row = lax.broadcasted_iota(jnp.int32, (tile_rows, LANES), 0)
                _accum(acc_ref, jnp.where(row < bound, z, 0.0))
        else:
            _accum(acc_ref, z)

        @pl.when(i == steps_per_split - 1)
        def _():
            out_ref[0] = acc_ref[...]                        # (8, 128) per split

    return kernel


def _pallas_sum_sq(z2d):
    """sum(z2d.astype(f32)**2) for a lane-aligned (R, 128) array."""
    R = z2d.shape[0]
    itemsize = jnp.dtype(z2d.dtype).itemsize
    # dtype-aware sublane packing: 8 rows (f32), 16 (bf16), 32 (int8/fp8).
    pack = max(SUBLANES, SUBLANES * (4 // max(1, itemsize)))

    vmem_cap, num_cores = _tpu_vmem_and_cores()
    block_bytes_target = min(MAX_BLOCK_BYTES, vmem_cap // 8)
    rows_budget = max(pack, (block_bytes_target // (LANES * itemsize)) // pack * pack)
    tile_rows = min(rows_budget, _round_up(R, pack))

    nblocks = _cdiv(R, tile_rows)
    num_splits = num_cores if (num_cores > 1 and nblocks >= 2 * num_cores) else 1
    steps_per_split = _cdiv(nblocks, num_splits)
    total_blocks = num_splits * steps_per_split
    full_blocks = R // tile_rows                 # blocks needing no masking
    needs_mask = total_blocks > full_blocks      # ragged last block / OOB blocks
    needs_clamp = total_blocks > nblocks         # some grid blocks start past data

    def z_index_map(s, i):
        g = s * steps_per_split + i
        if needs_clamp:
            # Re-read the last real block; its rows are fully masked in-kernel.
            g = jnp.minimum(g, nblocks - 1)
        return (g, 0)

    kernel = _make_sumsq_kernel(tile_rows, steps_per_split, full_blocks, R,
                                needs_mask)

    if num_splits > 1 and hasattr(pltpu, "CORE_PARALLEL"):
        dim_sem = (pltpu.CORE_PARALLEL, pltpu.ARBITRARY)     # shard splits on TCs
    else:
        dim_sem = ("arbitrary", "arbitrary")

    block_bytes = tile_rows * LANES * itemsize
    vmem_limit = int(min(vmem_cap, max(32 * 1024 * 1024,
                                       3 * block_bytes + (2 << 20))))

    partials = pl.pallas_call(
        kernel,
        out_shape=jax.ShapeDtypeStruct((num_splits, SUBLANES, LANES), jnp.float32),
        grid_spec=pltpu.PrefetchScalarGridSpec(
            num_scalar_prefetch=0,
            grid=(num_splits, steps_per_split),
            in_specs=[pl.BlockSpec((tile_rows, LANES), z_index_map)],
            out_specs=pl.BlockSpec((1, SUBLANES, LANES), lambda s, i: (s, 0, 0)),
            scratch_shapes=[pltpu.VMEM((SUBLANES, LANES), jnp.float32)],
        ),
        compiler_params=pltpu.CompilerParams(
            dimension_semantics=dim_sem,
            vmem_limit_bytes=vmem_limit,
        ),
    )(z2d)
    return jnp.sum(partials)


def nll_loss(z, sldj, k=64, use_pallas=None):
    """RealNVP NLL matching the PyTorch NLLLoss module. Returns a scalar f32."""
    z = jnp.asarray(z)
    sldj = jnp.asarray(sldj)
    B = z.shape[0]
    D = int(math.prod(z.shape[1:]))
    N = B * D

    itemsize = jnp.dtype(z.dtype).itemsize
    if use_pallas is None:
        use_pallas = (N * itemsize) >= SMALL_INPUT_BYTES

    R = N // LANES
    if use_pallas and R >= 1 and N % LANES == 0:
        # Zero-copy lane-dense view: (B, C, H, W) -> (N/128, 128).
        sum_zz = _pallas_sum_sq(z.reshape(R, LANES))
    else:
        # Tiny inputs, or N not a multiple of 128: plain fused reduce is already
        # at the HBM roofline and avoids any relayout/pad copy.
        sum_zz = jnp.sum(jnp.square(z.astype(jnp.float32)))

    const = jnp.float32(D * (0.5 * LOG_2PI + math.log(k)))
    return (0.5 * sum_zz / jnp.float32(B)) + const - jnp.mean(sldj.astype(jnp.float32))


def nll_loss_ref(z, sldj, k=64):
    B = z.shape[0]
    D = int(math.prod(z.shape[1:]))
    prior_ll = -0.5 * (z.astype(jnp.float32) ** 2 + LOG_2PI)
    prior_ll = prior_ll.reshape(B, -1).sum(-1) - math.log(k) * D
    ll = prior_ll + sldj.astype(jnp.float32)
    return -ll.mean()


if __name__ == "__main__":
    key = jax.random.PRNGKey(0)
    kz1, kz2, kz3, ks = jax.random.split(key, 4)

    B, C, H, W = 2, 4, 16, 16
    sldj = jax.random.normal(ks, (B,), dtype=jnp.float32)

    # Case 1: canonical shape, forced through the Pallas kernel (exact tiling).
    z1 = jax.random.normal(kz1, (B, C, H, W), dtype=jnp.float32)
    out1 = jax.block_until_ready(nll_loss(z1, sldj, k=64, use_pallas=True))
    ref1 = nll_loss_ref(z1, sldj, k=64)
    assert jnp.allclose(out1, ref1, rtol=1e-5, atol=1e-4), (out1, ref1)

    # Case 2: ragged row count (N/128 = 30 rows) -> in-kernel boundary mask.
    z2 = jax.random.normal(kz2, (2, 5, 24, 16), dtype=jnp.float32)
    out2 = jax.block_until_ready(nll_loss(z2, sldj, k=64, use_pallas=True))
    ref2 = nll_loss_ref(z2, sldj, k=64)
    assert jnp.allclose(out2, ref2, rtol=1e-5, atol=1e-4), (out2, ref2)

    # Case 3: bf16 input -> 16-row sublane packing path.
    z3 = jax.random.normal(kz3, (B, C, H, W), dtype=jnp.float32).astype(jnp.bfloat16)
    out3 = jax.block_until_ready(nll_loss(z3, sldj, k=64, use_pallas=True))
    ref3 = nll_loss_ref(z3, sldj, k=64)
    assert jnp.allclose(out3, ref3, rtol=1e-3, atol=1e-2), (out3, ref3)

    # Case 4: auto path (small input -> plain XLA reduce fallback).
    out4 = jax.block_until_ready(nll_loss(z1, sldj, k=64))
    assert jnp.allclose(out4, ref1, rtol=1e-5, atol=1e-4), (out4, ref1)

    print("KERNEL_OK")
</pallas_src>

<mosaic_0001>
module attributes {stable_mosaic.version = 11 : i64} {
  func.func @kernel(%arg0: i32, %arg1: i32, %arg2: memref<16x128xf32, #tpu.memory_space<vmem>>, %arg3: memref<1x8x128xf32, #tpu.memory_space<vmem>>, %arg4: memref<8x128xf32, #tpu.memory_space<vmem>>) attributes {dimension_semantics = [#tpu.dimension_semantics<arbitrary>, #tpu.dimension_semantics<arbitrary>], iteration_bounds = array<i64: 1, 1>, scalar_prefetch = 0 : i64, scratch_operands = 1 : i64, tpu.core_type = #tpu.core_type<tc>, window_params = [{transform_indices = @transform_0, window_bounds = array<i64: 16, 128>}, {transform_indices = @transform_1, window_bounds = array<i64: 1, 8, 128>}]} {
    %c0_i32 = arith.constant 0 : i32
    %0 = arith.cmpi eq, %arg1, %c0_i32 : i32
    %1 = arith.extui %0 : i1 to i32
    %c0_i32_0 = arith.constant 0 : i32
    %2 = arith.cmpi ne, %1, %c0_i32_0 : i32
    scf.if %2 {
      %cst_8 = arith.constant 0.000000e+00 : f32
      %13 = vector.broadcast %cst_8 : f32 to vector<8x128xf32>
      %c0_9 = arith.constant 0 : index
      %c0_10 = arith.constant 0 : index
      %14 = vector.load %arg4[%c0_9, %c0_10] : memref<8x128xf32, #tpu.memory_space<vmem>>, vector<8x128xf32>
      tpu.vector_store %arg4[%c0_9, %c0_10], %13 {strides = array<i32>} : memref<8x128xf32, #tpu.memory_space<vmem>>, vector<8x128xf32>,
    } else {
    }
    %c0 = arith.constant 0 : index
    %c0_1 = arith.constant 0 : index
    %3 = vector.load %arg2[%c0, %c0_1] : memref<16x128xf32, #tpu.memory_space<vmem>>, vector<16x128xf32>
    %4 = arith.mulf %3, %3 : vector<16x128xf32>
    %c0_2 = arith.constant 0 : index
    %c0_3 = arith.constant 0 : index
    %5 = vector.load %arg4[%c0_2, %c0_3] : memref<8x128xf32, #tpu.memory_space<vmem>>, vector<8x128xf32>
    %6 = vector.shape_cast %4 : vector<16x128xf32> to vector<2x8x128xf32>
    %cst = arith.constant dense<0.000000e+00> : vector<8x128xf32>
    %7 = vector.multi_reduction <add>, %6, %cst [0] : vector<2x8x128xf32> to vector<8x128xf32>
    %8 = arith.addf %5, %7 : vector<8x128xf32>
    %c0_4 = arith.constant 0 : index
    %c0_5 = arith.constant 0 : index
    %9 = vector.load %arg4[%c0_4, %c0_5] : memref<8x128xf32, #tpu.memory_space<vmem>>, vector<8x128xf32>
    tpu.vector_store %arg4[%c0_4, %c0_5], %8 {strides = array<i32>} : memref<8x128xf32, #tpu.memory_space<vmem>>, vector<8x128xf32>,
    %c0_i32_6 = arith.constant 0 : i32
    %10 = arith.cmpi eq, %arg1, %c0_i32_6 : i32
    %11 = arith.extui %10 : i1 to i32
    %c0_i32_7 = arith.constant 0 : i32
    %12 = arith.cmpi ne, %11, %c0_i32_7 : i32
    scf.if %12 {
      %c0_8 = arith.constant 0 : index
      %c0_9 = arith.constant 0 : index
      %13 = vector.load %arg4[%c0_8, %c0_9] : memref<8x128xf32, #tpu.memory_space<vmem>>, vector<8x128xf32>
      %c0_10 = arith.constant 0 : index
      %c0_11 = arith.constant 0 : index
      %c0_12 = arith.constant 0 : index
      %14 = vector.load %arg3[%c0_10, %c0_11, %c0_12] : memref<1x8x128xf32, #tpu.memory_space<vmem>>, vector<1x8x128xf32>
      %15 = vector.shape_cast %14 : vector<1x8x128xf32> to vector<8x128xf32>
      %16 = vector.shape_cast %13 : vector<8x128xf32> to vector<1x8x128xf32>
      tpu.vector_store %arg3[%c0_10, %c0_11, %c0_12], %16 {strides = array<i32>} : memref<1x8x128xf32, #tpu.memory_space<vmem>>, vector<1x8x128xf32>,
    } else {
    }
    return
  }
  func.func @transform_0(%arg0: i32, %arg1: i32) -> (i32, i32) {
    %c1_i32 = arith.constant 1 : i32
    %0 = arith.muli %arg0, %c1_i32 : i32
    %1 = arith.addi %0, %arg1 : i32
    %c0_i32 = arith.constant 0 : i32
    %c0_i32_0 = arith.constant 0 : i32
    return %1, %c0_i32 : i32, i32
  }
  func.func @transform_1(%arg0: i32, %arg1: i32) -> (i32, i32, i32) {
    %c0_i32 = arith.constant 0 : i32
    %c0_i32_0 = arith.constant 0 : i32
    %c0_i32_1 = arith.constant 0 : i32
    return %arg0, %c0_i32, %c0_i32_0 : i32, i32, i32
  }
}

</mosaic_0001>

<bundles_post_ra>
// kernel: tpu_custom_call.1
= control target key start
LH: loop header
LB: loop body
LE: loop exit
PB: predicated region body
PF: predicated region fallthrough
CT: control target
= control target key end

     0   :  { %6 = vsyncpa [#allocation4], 0  ;;  %s130_s0 = inlined_call_operand.hbm [shape: f32[16,128], index: 0, kind: input, shape index: {}]   ;;  %s131_s1 = inlined_call_operand.hbm [shape: f32[1,8,128], index: 1, kind: output, shape index: {}]  }
   0x1   :  { %7 = vsyncpa [#allocation5], 0  ;;  %s110_s6 = smov [#allocation3]  }
   0x2   :  { %s17_s7 = sshll.u32 %s110_s6, 4  ;;  %s18_s7 = int_to_ptr.vmem [resolvable:$true] %s17_s7 }
   0x3   :  { %s74_s8 = scalar_lea.vmem %s18_s7, 256  ;;  %p79_p1 = scmp.lt.s32.totalorder %s18_s7, %s18_s7 }
   0x4   :  { %p75_p0 = scmp.ne.s32.totalorder %s18_s7, %s74_s8  ;;  %p80_p2 = scmp.lt.s32.totalorder %s74_s8, %s74_s8 }
   0x6   :  { %p81_p3 = por %p80_p2, %p79_p1 }
   0x8   :  { %p82_p4 = pnand %p81_p3, %p75_p0 }
   0xa   :  { %85 = shalt.err (!%p82_p4)
}
   0xb   :  { %s111_s9 = smov 128   ;;  %s112_s10 = smov 8  }
   0xc   :  { %23 = dma.hbm_to_vmem [thread:$0]  %s130_s0, 256, %s18_s7, [#allocation4], %s111_s9, %s111_s9, %s112_s10  }
   0xd   :  { %106 = dma.done.wait [#allocation4], 256  }
   0xe   :  { %107 = vsyncadd [#allocation4], 4294967040  ;;  %v34_v0 = vld [vmem:[#allocation3] sm:$0xff]  ;;  %v35_v1 = vld [vmem:[#allocation3 + $0x8] sm:$0xff]  ;;  %s113_s13 = smov [#allocation6]  }
   0xf   :  { %s53_s14 = sshll.u32 %s113_s13, 4  ;;  %v36_v2 = vmul.f32 %v34_v0, %v34_v0  ;;  %v37_v3 = vmul.f32 %v35_v1, %v35_v1  ;;  %s54_s14 = int_to_ptr.vmem [resolvable:$true] %s53_s14 }
  0x10   :  { %s86_s15 = scalar_lea.vmem %s54_s14, 128  ;;  %p91_p6 = scmp.lt.s32.totalorder %s54_s14, %s54_s14 }
  0x11   :  { %v39_v4 = vadd.f32 %v37_v3, %v36_v2  ;;  %p87_p5 = scmp.ne.s32.totalorder %s54_s14, %s86_s15  ;;  %p92_p7 = scmp.lt.s32.totalorder %s86_s15, %s86_s15 }
  0x13   :  { %46 = vst [vmem:[#allocation6] sm:$0xff] %v39_v4  ;;  %p93_p8 = por %p92_p7, %p91_p6 }
  0x15   :  { %p94_p9 = pnand %p93_p8, %p87_p5 }
  0x17   :  { %97 = shalt.err (!%p94_p9)
}
  0x18   :  { %56 = dma.vmem_to_hbm [thread:$0]  %s54_s14, 128, %s131_s1, [#allocation5]  }
  0x19   :  { %108 = dma.done.wait [#allocation5], 128  }
  0x1a   :  { %109 = vsyncadd [#allocation5], 4294967168 }
  0x1b   :  { %60 = vsyncpa [#allocation4], 1 }
  0x1c   :  { %61 = vsyncpa [#allocation5], 1 }

</bundles_post_ra>
